<compile_context>
chip_gen: v7x
topology: tpu7x:2x2x1
jax: 0.10.0
libtpu: 0.0.40
codegen_flags: <defaults>
</compile_context>

<pallas_src>
import functools
import math

import jax
import jax.numpy as jnp
from jax.experimental import pallas as pl
from jax.experimental.pallas import tpu as pltpu
from jax.scipy.special import erf as jax_erf

_LANE = 128


def _erf(x):
    """Abramowitz & Stegun 7.1.26 erf approximation (max abs err ~1.5e-7).

    Built only from exp / abs / mul / add / where so it lowers cleanly in Mosaic.
    """
    sign = jnp.where(x >= 0.0, 1.0, -1.0).astype(jnp.float32)
    ax = jnp.abs(x)
    t = 1.0 / (1.0 + 0.3275911 * ax)
    poly = ((((1.061405429 * t - 1.453152027) * t + 1.421413741) * t
             - 0.284496736) * t + 0.254829592) * t
    return sign * (1.0 - poly * jnp.exp(-ax * ax))


def _pbg_input_kernel(x_ref, wt_ref, b_ref, o_ref):
    """out = erf((x @ Wt + b) / (sqrt(2) * ||x||_row)).  Wt: [Din, Dout_pad]."""
    x = x_ref[...]                                                    # [B, Din]
    linear = jnp.dot(x, wt_ref[...],
                     preferred_element_type=jnp.float32) + b_ref[...]  # [B, Dout_pad]
    norm = jnp.sqrt(jnp.sum(x * x, axis=1, keepdims=True))            # [B, 1]
    o_ref[...] = _erf(linear / (jnp.float32(math.sqrt(2.0)) * norm))


def _pbg_sampled_kernel(x_ref, u_ref, wt_ref, b_ref, o_ref, *, in_features):
    """Monte-Carlo 'hidden' / 'output' PBG layer (fused sampling+matmul+erf+mean).

    x: [B, Din] in [-1,1]; u: [B, T, Din] U[0,1) draws; Wt: [Din, Dout_pad]; b: [1, Dout_pad].
    """
    x = x_ref[...]                                                    # [B, Din]
    u = u_ref[...]                                                    # [B, T, Din]
    batch, t, d_in = u.shape
    proba = 0.5 + 0.5 * x                                             # [B, Din]
    s = jnp.where(u < proba[:, None, :], 1.0, -1.0).astype(jnp.float32)
    s2 = s.reshape(batch * t, d_in)                                   # [B*T, Din]
    linear = jnp.dot(s2, wt_ref[...],
                     preferred_element_type=jnp.float32) + b_ref[...]  # [B*T, Dout_pad]
    scale = jnp.float32(1.0 / math.sqrt(2.0 * in_features))
    e = _erf(linear * scale)
    o_ref[...] = jnp.sum(e.reshape(batch, t, -1), axis=1) * jnp.float32(1.0 / t)


def _pad_params(weight, bias):
    """PyTorch [out, in] -> pre-transposed [in, out_pad] (lane-dense) + [1, out_pad] bias."""
    d_out, d_in = weight.shape
    d_out_p = ((d_out + _LANE - 1) // _LANE) * _LANE
    wt = jnp.zeros((d_in, d_out_p), jnp.float32).at[:, :d_out].set(
        weight.T.astype(jnp.float32))
    b2 = jnp.zeros((1, d_out_p), jnp.float32).at[:, :d_out].set(
        bias.astype(jnp.float32))
    return wt, b2, d_out, d_out_p


def _vmem_specs(n):
    return [pl.BlockSpec(memory_space=pltpu.MemorySpace.VMEM) for _ in range(n)]


def pbg_layer_forward(x, weight, bias, position, uniform_samples=None):
    """Forward pass of PBGLayer (eval mode).

    Args:
      x: [batch, in_features] float32 (must lie in [-1, 1] for 'hidden'/'output').
      weight: [out_features, in_features]  (PyTorch Linear layout).
      bias: [out_features].
      position: 'input' | 'hidden' | 'output'.
      uniform_samples: [batch, sample_size, in_features] U[0,1) draws replacing
        torch.bernoulli's internal RNG (required for 'hidden'/'output').
    """
    batch, d_in = x.shape
    wt, b2, d_out, d_out_p = _pad_params(weight, bias)

    if position == "input":
        out = pl.pallas_call(
            _pbg_input_kernel,
            out_shape=jax.ShapeDtypeStruct((batch, d_out_p), jnp.float32),
            in_specs=_vmem_specs(3),
            out_specs=pl.BlockSpec(memory_space=pltpu.MemorySpace.VMEM),
        )(x.astype(jnp.float32), wt, b2)
    elif position in ("hidden", "output"):
        assert uniform_samples is not None and uniform_samples.shape[0] == batch
        assert uniform_samples.shape[2] == d_in
        kernel = functools.partial(_pbg_sampled_kernel, in_features=d_in)
        out = pl.pallas_call(
            kernel,
            out_shape=jax.ShapeDtypeStruct((batch, d_out_p), jnp.float32),
            in_specs=_vmem_specs(4),
            out_specs=pl.BlockSpec(memory_space=pltpu.MemorySpace.VMEM),
        )(x.astype(jnp.float32), uniform_samples.astype(jnp.float32), wt, b2)
    else:
        raise ValueError(f"unknown position: {position}")
    return out[:, :d_out]   # slice padded lanes back to the real out_features


# ----------------------- pure-JAX references (exact erf, full-precision matmul) ---------

def _ref_input(x, w, b):
    linear = jnp.dot(x, w.T, precision=jax.lax.Precision.HIGHEST) + b
    norm = jnp.sqrt(jnp.sum(x * x, axis=1, keepdims=True))
    return jax_erf(linear / (jnp.sqrt(2.0) * norm))


def _ref_sampled(x, w, b, u):
    proba = 0.5 + 0.5 * x
    s = jnp.where(u < proba[:, None, :], 1.0, -1.0)
    linear = jnp.einsum("btk,ok->bto", s, w,
                        precision=jax.lax.Precision.HIGHEST) + b
    e = jax_erf(linear / jnp.sqrt(2.0 * x.shape[1]))
    return jnp.mean(e, axis=1)


if __name__ == "__main__":
    key = jax.random.PRNGKey(0)
    batch, in_features, hidden, sample_size = 8, 16, 32, 32

    (k_x, k_w1, k_b1, k_w2, k_b2, k_w3, k_b3, k_u2, k_u3) = jax.random.split(key, 9)
    x = jax.random.normal(k_x, (batch, in_features), jnp.float32)

    # PyTorch-layout parameters [out, in] for the three layer positions.
    w1 = 0.5 * jax.random.normal(k_w1, (hidden, in_features), jnp.float32)
    b1 = 0.1 * jax.random.normal(k_b1, (hidden,), jnp.float32)
    w2 = 0.5 * jax.random.normal(k_w2, (hidden, hidden), jnp.float32)
    b2 = 0.1 * jax.random.normal(k_b2, (hidden,), jnp.float32)
    w3 = 0.5 * jax.random.normal(k_w3, (1, hidden), jnp.float32)
    b3 = 0.1 * jax.random.normal(k_b3, (1,), jnp.float32)

    # U[0,1) draws standing in for torch.bernoulli (T = sample_size).
    u2 = jax.random.uniform(k_u2, (batch, sample_size, hidden), jnp.float32)
    u3 = jax.random.uniform(k_u3, (batch, sample_size, hidden), jnp.float32)

    # PBGLayer(position='input'): 16 -> 32
    h1 = pbg_layer_forward(x, w1, b1, "input")
    # PBGLayer(position='hidden'): 32 -> 32 (Monte-Carlo)
    h2 = pbg_layer_forward(h1, w2, b2, "hidden", uniform_samples=u2)
    # PBGLayer(position='output'): 32 -> 1 (Monte-Carlo)
    y = pbg_layer_forward(h2, w3, b3, "output", uniform_samples=u3)
    y = jax.block_until_ready(y)

    assert h1.shape == (batch, hidden)
    assert h2.shape == (batch, hidden)
    assert y.shape == (batch, 1)

    # Verify each position against the exact reference on the same inputs / same draws.
    r1 = _ref_input(x, w1, b1)
    r2 = _ref_sampled(h1, w2, b2, u2)
    r3 = _ref_sampled(h2, w3, b3, u3)
    assert jnp.allclose(h1, r1, atol=1e-3), float(jnp.max(jnp.abs(h1 - r1)))
    assert jnp.allclose(h2, r2, atol=1e-3), float(jnp.max(jnp.abs(h2 - r2)))
    assert jnp.allclose(y, r3, atol=1e-3), float(jnp.max(jnp.abs(y - r3)))

    print("KERNEL_OK")
</pallas_src>

<mosaic_0001>
module attributes {stable_mosaic.version = 11 : i64} {
  func.func @_pbg_input_kernel(%arg0: memref<8x16xf32, #tpu.memory_space<vmem>>, %arg1: memref<16x128xf32, #tpu.memory_space<vmem>>, %arg2: memref<1x128xf32, #tpu.memory_space<vmem>>, %arg3: memref<8x128xf32, #tpu.memory_space<vmem>>) attributes {dimension_semantics = [], scalar_prefetch = 0 : i64, scratch_operands = 0 : i64, tpu.core_type = #tpu.core_type<tc>} {
    %c0 = arith.constant 0 : index
    %c0_0 = arith.constant 0 : index
    %0 = vector.load %arg0[%c0, %c0_0] : memref<8x16xf32, #tpu.memory_space<vmem>>, vector<8x16xf32>
    %c0_1 = arith.constant 0 : index
    %c0_2 = arith.constant 0 : index
    %1 = vector.load %arg1[%c0_1, %c0_2] : memref<16x128xf32, #tpu.memory_space<vmem>>, vector<16x128xf32>
    %cst = arith.constant dense<0.000000e+00> : vector<8x128xf32>
    %2 = tpu.matmul %0, %1, %cst {dimension_numbers = #tpu.dot_dimension_numbers<[1], [0], [0], [1], [0, 0, 1, 1], [], []>} : vector<8x16xf32>, vector<16x128xf32>, vector<8x128xf32> -> vector<8x128xf32>
    %c0_3 = arith.constant 0 : index
    %c0_4 = arith.constant 0 : index
    %3 = vector.load %arg2[%c0_3, %c0_4] : memref<1x128xf32, #tpu.memory_space<vmem>>, vector<1x128xf32>
    %4 = vector.broadcast %3 : vector<1x128xf32> to vector<8x128xf32>
    %5 = arith.addf %2, %4 : vector<8x128xf32>
    %6 = arith.mulf %0, %0 : vector<8x16xf32>
    %cst_5 = arith.constant dense<0.000000e+00> : vector<8xf32>
    %7 = vector.multi_reduction <add>, %6, %cst_5 [1] : vector<8x16xf32> to vector<8xf32>
    %8 = vector.shape_cast %7 : vector<8xf32> to vector<8x1xf32>
    %9 = math.sqrt %8 : vector<8x1xf32>
    %cst_6 = arith.constant 1.41421354 : f32
    %10 = vector.broadcast %cst_6 : f32 to vector<8x1xf32>
    %11 = arith.mulf %10, %9 : vector<8x1xf32>
    %12 = vector.broadcast %11 : vector<8x1xf32> to vector<8x128xf32>
    %13 = arith.divf %5, %12 : vector<8x128xf32>
    %cst_7 = arith.constant 0.000000e+00 : f32
    %14 = vector.broadcast %cst_7 : f32 to vector<8x128xf32>
    %15 = arith.cmpf oge, %13, %14 : vector<8x128xf32>
    %cst_8 = arith.constant 1.000000e+00 : f32
    %cst_9 = arith.constant -1.000000e+00 : f32
    %16 = vector.broadcast %cst_8 : f32 to vector<8x128xf32>
    %17 = vector.broadcast %cst_9 : f32 to vector<8x128xf32>
    %18 = arith.select %15, %16, %17 : vector<8x128xi1>, vector<8x128xf32>
    %19 = math.absf %13 : vector<8x128xf32>
    %cst_10 = arith.constant 0.327591091 : f32
    %20 = vector.broadcast %cst_10 : f32 to vector<8x128xf32>
    %21 = arith.mulf %20, %19 : vector<8x128xf32>
    %cst_11 = arith.constant 1.000000e+00 : f32
    %22 = vector.broadcast %cst_11 : f32 to vector<8x128xf32>
    %23 = arith.addf %22, %21 : vector<8x128xf32>
    %cst_12 = arith.constant 1.000000e+00 : f32
    %24 = vector.broadcast %cst_12 : f32 to vector<8x128xf32>
    %25 = arith.divf %24, %23 : vector<8x128xf32>
    %cst_13 = arith.constant 1.06140542 : f32
    %26 = vector.broadcast %cst_13 : f32 to vector<8x128xf32>
    %27 = arith.mulf %26, %25 : vector<8x128xf32>
    %cst_14 = arith.constant 1.45315206 : f32
    %28 = vector.broadcast %cst_14 : f32 to vector<8x128xf32>
    %29 = arith.subf %27, %28 : vector<8x128xf32>
    %30 = arith.mulf %29, %25 : vector<8x128xf32>
    %cst_15 = arith.constant 1.42141378 : f32
    %31 = vector.broadcast %cst_15 : f32 to vector<8x128xf32>
    %32 = arith.addf %30, %31 : vector<8x128xf32>
    %33 = arith.mulf %32, %25 : vector<8x128xf32>
    %cst_16 = arith.constant 0.284496725 : f32
    %34 = vector.broadcast %cst_16 : f32 to vector<8x128xf32>
    %35 = arith.subf %33, %34 : vector<8x128xf32>
    %36 = arith.mulf %35, %25 : vector<8x128xf32>
    %cst_17 = arith.constant 0.254829586 : f32
    %37 = vector.broadcast %cst_17 : f32 to vector<8x128xf32>
    %38 = arith.addf %36, %37 : vector<8x128xf32>
    %39 = arith.mulf %38, %25 : vector<8x128xf32>
    %cst_18 = arith.constant 0.000000e+00 : f32
    %40 = vector.broadcast %cst_18 : f32 to vector<8x128xf32>
    %41 = arith.subf %40, %19 : vector<8x128xf32>
    %42 = arith.mulf %41, %19 : vector<8x128xf32>
    %43 = math.exp %42 : vector<8x128xf32>
    %44 = arith.mulf %39, %43 : vector<8x128xf32>
    %cst_19 = arith.constant 1.000000e+00 : f32
    %45 = vector.broadcast %cst_19 : f32 to vector<8x128xf32>
    %46 = arith.subf %45, %44 : vector<8x128xf32>
    %47 = arith.mulf %18, %46 : vector<8x128xf32>
    %c0_20 = arith.constant 0 : index
    %c0_21 = arith.constant 0 : index
    %48 = vector.load %arg3[%c0_20, %c0_21] : memref<8x128xf32, #tpu.memory_space<vmem>>, vector<8x128xf32>
    tpu.vector_store %arg3[%c0_20, %c0_21], %47 {strides = array<i32>} : memref<8x128xf32, #tpu.memory_space<vmem>>, vector<8x128xf32>,
    return
  }
}

</mosaic_0001>

<bundles_post_ra>
// kernel: tpu_custom_call.1
= control target key start
LH: loop header
LB: loop body
LE: loop exit
PB: predicated region body
PF: predicated region fallthrough
CT: control target
= control target key end

     0   :  { %8 = vsyncpa [#allocation3], 0  ;;  %s360_s0 = inlined_call_operand.hbm [shape: f32[8,16], index: 0, kind: input, shape index: {}]   ;;  %s361_s1 = inlined_call_operand.hbm [shape: f32[16,128], index: 1, kind: input, shape index: {}]   ;;  %s362_s2 = inlined_call_operand.vmem [shape: f32[1,128], index: 2, kind: input, shape index: {}]   ;;  %s363_s3 = inlined_call_operand.hbm [shape: f32[8,128], index: 3, kind: output, shape index: {}]  }
   0x1   :  { %9 = vsyncpa [#allocation6], 0 }
   0x2   :  { %10 = vsyncpa [#allocation4], 0  ;;  %s285_s12 = smov [#allocation2]   ;;  %s286_s14 = smov [#allocation5]  }
   0x3   :  { %s17_s13 = sshll.u32 %s285_s12, 4  ;;  %s26_s15 = sshll.u32 %s286_s14, 4  ;;  %s18_s13 = int_to_ptr.vmem [resolvable:$true] %s17_s13  ;;  %s314_s15 = int_to_ptr.vmem [resolvable:$true] %s26_s15 }
   0x4   :  { %s213_s18 = scalar_lea.hbm %s360_s0, 128 }
   0x5   :  { %p214_p0 = scmp.ne.s32.totalorder %s360_s0, %s213_s18  ;;  %p217_p1 = scmp.lt.u32.totalorder %s213_s18, %s360_s0 }
   0x7   :  { %p219_p2 = pnand %p217_p1, %p214_p0 }
   0x9   :  { %222 = shalt.err (!%p219_p2)
}
   0xa   :  { %s223_s23 = scalar_lea.vmem %s18_s13, 128  ;;  %p228_p4 = scmp.lt.s32.totalorder %s18_s13, %s18_s13 }
   0xb   :  { %p224_p3 = scmp.ne.s32.totalorder %s18_s13, %s223_s23  ;;  %p229_p5 = scmp.lt.s32.totalorder %s223_s23, %s223_s23 }
   0xd   :  { %p230_p6 = por %p229_p5, %p228_p4 }
   0xf   :  { %p231_p7 = pnand %p230_p6, %p224_p3 }
  0x11   :  { %234 = shalt.err (!%p231_p7)
}
  0x12   :  { %20 = dma.hbm_to_vmem [thread:$0]  %s360_s0, 128, %s18_s13, [#allocation3]  }
  0x13   :  { %s235_s28 = scalar_lea.hbm %s361_s1, 256 }
  0x14   :  { %p236_p8 = scmp.ne.s32.totalorder %s361_s1, %s235_s28  ;;  %p239_p9 = scmp.lt.u32.totalorder %s235_s28, %s361_s1 }
  0x16   :  { %p241_p10 = pnand %p239_p9, %p236_p8 }
  0x18   :  { %244 = shalt.err (!%p241_p10)
}
  0x19   :  { %s245_s6 = scalar_lea.vmem %s314_s15, 256  ;;  %p250_p12 = scmp.lt.s32.totalorder %s314_s15, %s314_s15 }
  0x1a   :  { %p246_p11 = scmp.ne.s32.totalorder %s314_s15, %s245_s6  ;;  %p251_p13 = scmp.lt.s32.totalorder %s245_s6, %s245_s6 }
  0x1c   :  { %p252_p0 = por %p251_p13, %p250_p12 }
  0x1e   :  { %p253_p1 = pnand %p252_p0, %p246_p11 }
  0x20   :  { %256 = shalt.err (!%p253_p1)
}
  0x21   :  { %s287_s0 = smov 128   ;;  %s288_s7 = smov 8  }
  0x22   :  { %32 = dma.hbm_to_vmem [thread:$0]  %s361_s1, 256, %s314_s15, [#allocation6], %s287_s0, %s287_s0, %s288_s7  }
  0x23   :  { %279 = dma.done.wait [#allocation3], 128  }
  0x24   :  { %280 = vsyncadd [#allocation3], 4294967168 }
  0x25   :  { %281 = dma.done.wait [#allocation6], 256  }
  0x26   :  { %282 = vsyncadd [#allocation6], 4294967040  ;;  %v289_v0 = vmov 0.0|0.0   ;;  %vm290_vm0 = vmmov 0   ;;  %v291_v1 = vmov 0.0   ;;  %v42_v2 = vld [vmem:[#allocation5] sm:$0xff] }
  0x27   :  { %193 = vmatprep.subr.bf16.mxu0 %v289_v0  ;;  %190 = vmatprep.mubr.msk.f32.mxu0 %vm290_vm0, %v291_v1  ;;  %v43_v3 = vld [vmem:[#allocation5 + $0x8] sm:$0xff]  ;;  %v41_v4 = vld [vmem:[#allocation2] sm:$0xff]  ;;  %vm51_vm1 = vcmask 130048   ;;  %v293_v40 = vmov -1.0  }
  0x28   :  { %v194_v5 = vpack.c.bf16 %v43_v3, %v42_v2  ;;  %v125_v6 = vmul.f32 %v41_v4, %v41_v4  ;;  %v179_v15 = vld [vmem:[%s362_s2] ss:$0 sm:$0xff]  ;;  %s292_s2 = smov [#allocation7]  }
  0x29   :  { %s169_s11 = sshll.u32 %s292_s2, 4  ;;  %s170_s11 = int_to_ptr.vmem [resolvable:$true] %s169_s11 }
  0x2a   :  { %195 = vmatpush3.bf16.msra.mxu0 %v194_v5  ;;  %v126_v7 = vsel %vm51_vm1, %v125_v6, 0.0  ;;  %s257_s12 = scalar_lea.vmem %s170_s11, 128  ;;  %p262_p3 = scmp.lt.s32.totalorder %s170_s11, %s170_s11 }
  0x2b   :  { %127 = vadd.xlane.f32.xlu0 %v126_v7  ;;  %p258_p2 = scmp.ne.s32.totalorder %s170_s11, %s257_s12  ;;  %p263_p4 = scmp.lt.s32.totalorder %s257_s12, %s257_s12 }
  0x2d   :  { %191 = vmatmul.mubr.msk.f32.vlgmr.msra.gmra.mrb[0].mxu0 %vm51_vm1, %v41_v4  ;;  %p264_p5 = por %p263_p4, %p262_p3 }
  0x2f   :  { %p265_p6 = pnand %p264_p5, %p258_p2 }
  0xb8   :  { %v128_v8 = vpop.xlane.xlu0 %127 }
  0xb9   :  { %205 = vrsqrt.f32 %v128_v8  ;;  %vm131_vm2 = vcmp.eq.f32.partialorder %v128_v8, inf  ;;  %v134_v11 = vand.u32 2147483648, %v128_v8  ;;  %vm133_vm3 = vcmp.eq.f32.partialorder %v128_v8, 0.0 }
  0xc3   :  { %v206_v9 = vpop.eup %205 }
  0xc4   :  { %v130_v10 = vmul.f32 %v206_v9, %v128_v8 }
  0xc6   :  { %v132_v12 = vsel %vm131_vm2, %v128_v8, %v130_v10 }
  0xc7   :  { %v135_v13 = vsel %vm133_vm3, %v134_v11, %v132_v12 }
  0xc8   :  { %v136_v14 = vmul.f32 1.4142135, %v135_v13 }
  0xca   :  { %207 = vrcp.f32 %v136_v14 }
  0xd4   :  { %v208_v19 = vpop.eup %207 }
 0x100   :  { %v121_v16 = vpop.f32.mrb[0].mxu0 }
 0x101   :  { %v122_v17 = vadd.f32 %v179_v15, %v121_v16  ;;  %v192_v18 = vpop.f32.mrb[1].mxu0 }
 0x103   :  { %v138_v20 = vmul.f32 %v208_v19, %v122_v17 }
 0x105   :  { %v141_v21 = vand.u32 2147483647, %v138_v20  ;;  %vm139_vm4 = vcmp.ge.f32.partialorder %v138_v20, 0.0 }
 0x106   :  { %v140_v41 = vsel %vm139_vm4, 1.0, %v293_v40 }
 0x107   :  { %v142_v22 = vmul.f32 0.3275911, %v141_v21  ;;  %v155_v24 = vsub.f32 0.0, %v141_v21 }
 0x109   :  { %v143_v23 = vadd.f32 1.0, %v142_v22  ;;  %v156_v26 = vmul.f32 %v155_v24, %v141_v21 }
 0x10b   :  { %209 = vrcp.f32 %v143_v23  ;;  %v157_v29 = vmul.f32 1.442695, %v156_v26 }
 0x10d   :  { %211 = vpow2.f32 %v157_v29 }
 0x115   :  { %v210_v25 = vpop.eup %209 }
 0x116   :  { %v146_v27 = vmul.f32 1.0614054, %v210_v25 }
 0x117   :  { %v212_v37 = vpop.eup %211 }
 0x118   :  { %v181_v28 = vadd.f32 -1.4531521, %v146_v27 }
 0x11a   :  { %v148_v30 = vmul.f32 %v210_v25, %v181_v28 }
 0x11c   :  { %v149_v31 = vadd.f32 1.4214138, %v148_v30 }
 0x11e   :  { %v150_v32 = vmul.f32 %v210_v25, %v149_v31 }
 0x120   :  { %v182_v33 = vadd.f32 -0.28449672, %v150_v32 }
 0x122   :  { %v152_v34 = vmul.f32 %v210_v25, %v182_v33 }
 0x124   :  { %v153_v35 = vadd.f32 0.2548296, %v152_v34 }
 0x126   :  { %v154_v36 = vmul.f32 %v210_v25, %v153_v35 }
 0x128   :  { %v159_v38 = vmul.f32 %v212_v37, %v154_v36 }
 0x12a   :  { %v160_v39 = vsub.f32 1.0, %v159_v38 }
 0x12c   :  { %v161_v42 = vmul.f32 %v160_v39, %v140_v41 }
 0x12e   :  { %162 = vst [vmem:[#allocation7] sm:$0xff] %v161_v42 }
 0x12f   :  { %268 = shalt.err (!%p265_p6)
}
 0x130   :  { %s269_s15 = scalar_lea.hbm %s363_s3, 128 }
 0x131   :  { %p270_p7 = scmp.ne.s32.totalorder %s363_s3, %s269_s15  ;;  %p273_p8 = scmp.lt.u32.totalorder %s269_s15, %s363_s3 }
 0x133   :  { %p275_p9 = pnand %p273_p8, %p270_p7 }
 0x135   :  { %278 = shalt.err (!%p275_p9)
}
 0x136   :  { %172 = dma.vmem_to_hbm [thread:$0]  %s170_s11, 128, %s363_s3, [#allocation4]  }
 0x137   :  { %283 = dma.done.wait [#allocation4], 128  }
 0x138   :  { %284 = vsyncadd [#allocation4], 4294967168 }
 0x139   :  { %176 = vsyncpa [#allocation3], 1 }
 0x13a   :  { %177 = vsyncpa [#allocation6], 1 }
 0x13b   :  { %178 = vsyncpa [#allocation4], 1 }

</bundles_post_ra>
